<compile_context>
chip_gen: v7x
topology: tpu7x:2x2x1
jax: 0.10.0
libtpu: 0.0.40
codegen_flags: <defaults>
</compile_context>

<pallas_src>
import functools

import jax
import jax.numpy as jnp
from jax.experimental import pallas as pl
from jax.experimental.pallas import tpu as pltpu


def _dice_stats_kernel(t_ref, x_ref, o_ref, *, hw, tile_p, nt_per_chunk, need_mask):
    """Per-class [intersection, sum_probs, sum_targets] for one pixel tile.

    t_ref : (1, TP) int    class labels for this pixel tile
    x_ref : (C, TP) float  logits for this pixel tile
    o_ref : (C, 3)  f32    per-(batch, chunk) stats; resident across the inner axis
    """
    i = pl.program_id(2)

    @pl.when(i == 0)
    def _init():
        o_ref[...] = jnp.zeros_like(o_ref)

    x = x_ref[...].astype(jnp.float32)                      # (C, TP)
    # softmax over the class (sublane) axis == F.softmax(inputs, dim=1)
    m = jnp.max(x, axis=0, keepdims=True)                   # (1, TP)
    e = jnp.exp(x - m)                                      # (C, TP)
    d = jnp.sum(e, axis=0, keepdims=True)                   # (1, TP)
    r = pl.reciprocal(d, approx=True)                       # EUP vrcp
    r = r * (2.0 - d * r)                                   # one Newton step on the VPU
    p = e * r                                               # (C, TP) probabilities

    tgt = t_ref[...].astype(jnp.int32)                      # (1, TP)
    class_ids = jax.lax.broadcasted_iota(jnp.int32, x.shape, 0)
    t_onehot = (tgt == class_ids).astype(jnp.float32)       # (C, TP)

    def _accumulate(pp, tt):
        # Per-tile reductions to (C, 1), accumulated into the resident output.
        o_ref[:, 0:1] += jnp.sum(pp * tt, axis=1, keepdims=True)
        o_ref[:, 1:2] += jnp.sum(pp, axis=1, keepdims=True)
        o_ref[:, 2:3] += jnp.sum(tt, axis=1, keepdims=True)

    if need_mask:
        c = pl.program_id(1)
        tile_start = (c * nt_per_chunk + i) * tile_p
        is_tail = tile_start + tile_p > hw

        @pl.when(jnp.logical_not(is_tail))
        def _interior():
            _accumulate(p, t_onehot)

        @pl.when(is_tail)
        def _tail():
            # Lanes past the end of the image carry garbage from the partial DMA;
            # zero their contribution to all three sums (only runs on the last tile).
            lane = jax.lax.broadcasted_iota(jnp.int32, x.shape, 1)
            valid = lane < (hw - tile_start)
            _accumulate(jnp.where(valid, p, 0.0), jnp.where(valid, t_onehot, 0.0))
    else:
        _accumulate(p, t_onehot)


def _vmem_capacity_bytes():
    try:
        cap = getattr(pltpu.get_tpu_info(), "vmem_capacity_bytes", None)
        if cap:
            return int(cap)
    except Exception:
        pass
    return 64 * 1024 * 1024          # conservative fallback (v7x-sized)


def _round_up(x, m):
    return -(-x // m) * m


def _pick_tile(num_classes, hw, logit_itemsize, target_itemsize, desired_tile):
    """Pick a lane-aligned pixel tile + VMEM limit with a generation-aware cap."""
    phys = _vmem_capacity_bytes()
    cap = (phys * 3) // 4            # ~48 MiB on v7x (64 MiB), ~96 MiB on v5e/v6e (128 MiB)

    sub_l = max(8, 32 // int(logit_itemsize))     # sublane pad of class axis (dtype-aware)
    c_pad_l = _round_up(num_classes, sub_l)
    sub_t = max(8, 32 // int(target_itemsize))
    c_pad_f = _round_up(num_classes, 8)           # f32 temporaries inside the body

    def est(tp):
        tpp = _round_up(tp, 128)
        return (2 * c_pad_l * tpp * logit_itemsize        # double-buffered logits blocks
                + 2 * sub_t * tpp * target_itemsize       # double-buffered target blocks
                + 8 * c_pad_f * tpp * 4                   # live f32 temporaries headroom
                + (2 << 20))

    def limit(tp):
        return int(min(phys - (8 << 20), max(est(tp), 16 << 20)))

    # Whole pixel row per batch element whenever it fits (no masking, inner extent 1).
    if hw <= 256 or est(hw) <= cap:
        return hw, limit(hw)

    # Otherwise: largest lane-aligned tile within the budget, then split HW evenly
    # across the resulting tile count so only the final tile may be partial.
    tp = max(128, min(desired_tile, (hw // 128) * 128))
    while tp > 512 and est(tp) > cap:
        tp = max(512, (tp // 2 // 128) * 128)
    nt = -(-hw // tp)
    tp = _round_up(-(-hw // nt), 128)
    return tp, limit(tp)


@functools.partial(jax.jit, static_argnames=("num_classes", "epsilon", "tile_p"))
def weighted_multiclass_dice_loss(logits, targets, weights=None, *, num_classes,
                                  epsilon=1e-6, tile_p=65536):
    N, C, H, W = logits.shape
    assert C == num_classes
    HW = H * W

    if weights is None:
        weights = jnp.ones((num_classes,), dtype=jnp.float32)

    # Free reshapes only -- no transpose / extra HBM pass.  bf16 logits and
    # int8/uint8 targets are accepted as-is; the kernel upcasts internally.
    x = logits.reshape(N, C, HW)
    t = targets.reshape(N, 1, HW)

    tp, vmem_limit = _pick_tile(C, HW, jnp.dtype(x.dtype).itemsize,
                                jnp.dtype(t.dtype).itemsize, tile_p)

    # With an odd batch (notably N == 1), split the pixel range into two "parallel"
    # chunks so both v7x TensorCores get work (no-op for the semantics).
    if (N % 2 == 1) and HW >= 256 and tp >= HW:
        tp = _round_up(-(-HW // 2), 128)
    nt = -(-HW // tp)
    num_chunks = 2 if (N % 2 == 1 and nt >= 2 and nt % 2 == 0) else 1
    nt_per_chunk = nt // num_chunks
    need_mask = (HW % tp) != 0

    kernel = functools.partial(_dice_stats_kernel, hw=HW, tile_p=tp,
                               nt_per_chunk=nt_per_chunk, need_mask=need_mask)

    stats = pl.pallas_call(
        kernel,
        out_shape=jax.ShapeDtypeStruct((N, num_chunks, C, 3), jnp.float32),
        grid_spec=pltpu.PrefetchScalarGridSpec(
            num_scalar_prefetch=0,
            grid=(N, num_chunks, nt_per_chunk),
            in_specs=[
                pl.BlockSpec((None, 1, tp),
                             lambda n, c, i: (n, 0, c * nt_per_chunk + i)),  # targets
                pl.BlockSpec((None, C, tp),
                             lambda n, c, i: (n, 0, c * nt_per_chunk + i)),  # logits
            ],
            out_specs=pl.BlockSpec((None, None, C, 3),
                                   lambda n, c, i: (n, c, 0, 0)),
        ),
        compiler_params=pltpu.CompilerParams(
            dimension_semantics=("parallel", "parallel", "arbitrary"),
            vmem_limit_bytes=int(vmem_limit),
        ),
    )(t, x)

    per_class = jnp.sum(stats, axis=(0, 1))          # (C, 3): combine batch & chunk partials
    intersection = per_class[:, 0]
    sum_probs = per_class[:, 1]
    sum_targets = per_class[:, 2]

    dice_loss = 1.0 - (2.0 * intersection + epsilon) / (sum_probs + sum_targets + epsilon)
    return jnp.sum(weights.astype(jnp.float32) * dice_loss) / num_classes


def _reference_loss(logits, targets, weights, num_classes, epsilon=1e-6):
    """Pure-JAX mirror of the PyTorch forward (for sanity checking)."""
    probs = jax.nn.softmax(logits.astype(jnp.float32), axis=1)
    total = 0.0
    for c in range(num_classes):
        p_c = probs[:, c]
        t_c = (targets == c).astype(jnp.float32)
        inter = jnp.sum(p_c * t_c)
        union = jnp.sum(p_c) + jnp.sum(t_c)
        total = total + weights[c] * (1.0 - (2.0 * inter + epsilon) / (union + epsilon))
    return total / num_classes


if __name__ == "__main__":
    num_classes = 4
    N, H, W = 2, 16, 16

    key = jax.random.PRNGKey(0)
    k_logits, k_targets = jax.random.split(key)
    logits = jax.random.normal(k_logits, (N, num_classes, H, W), dtype=jnp.float32)
    targets = jax.random.randint(k_targets, (N, H, W), 0, num_classes, dtype=jnp.int32)

    # Module default: weights=None -> ones(num_classes). Deterministic in-script.
    weights = jnp.ones((num_classes,), dtype=jnp.float32)

    loss = weighted_multiclass_dice_loss(
        logits, targets, weights, num_classes=num_classes, epsilon=1e-6
    )
    loss = jax.block_until_ready(loss)

    ref = _reference_loss(logits, targets, weights, num_classes)
    assert jnp.allclose(loss, ref, rtol=1e-5, atol=1e-6), (loss, ref)

    print("KERNEL_OK")
</pallas_src>

<mosaic_0001>
module attributes {stable_mosaic.version = 11 : i64} {
  func.func @_dice_stats_kernel(%arg0: i32, %arg1: i32, %arg2: i32, %arg3: memref<1x1x256xi32, #tpu.memory_space<vmem>>, %arg4: memref<1x4x256xf32, #tpu.memory_space<vmem>>, %arg5: memref<1x1x4x3xf32, #tpu.memory_space<vmem>>) attributes {dimension_semantics = [#tpu.dimension_semantics<parallel>, #tpu.dimension_semantics<parallel>, #tpu.dimension_semantics<arbitrary>], iteration_bounds = array<i64: 2, 1, 1>, scalar_prefetch = 0 : i64, scratch_operands = 0 : i64, tpu.core_type = #tpu.core_type<tc>, window_params = [{transform_indices = @transform_0, window_bounds = array<i64: 1, 1, 256>}, {transform_indices = @transform_1, window_bounds = array<i64: 1, 4, 256>}, {transform_indices = @transform_2, window_bounds = array<i64: 1, 1, 4, 3>}]} {
    %c0_i32 = arith.constant 0 : i32
    %0 = arith.cmpi eq, %arg2, %c0_i32 : i32
    %1 = arith.extui %0 : i1 to i32
    %c0_i32_0 = arith.constant 0 : i32
    %2 = arith.cmpi ne, %1, %c0_i32_0 : i32
    scf.if %2 {
      %cst_33 = arith.constant 0.000000e+00 : f32
      %51 = vector.broadcast %cst_33 : f32 to vector<4x3xf32>
      %c0_34 = arith.constant 0 : index
      %c0_35 = arith.constant 0 : index
      %c0_36 = arith.constant 0 : index
      %c0_37 = arith.constant 0 : index
      %52 = vector.load %arg5[%c0_34, %c0_35, %c0_36, %c0_37] : memref<1x1x4x3xf32, #tpu.memory_space<vmem>>, vector<1x1x4x3xf32>
      %53 = vector.shape_cast %52 : vector<1x1x4x3xf32> to vector<4x3xf32>
      %54 = vector.shape_cast %51 : vector<4x3xf32> to vector<1x1x4x3xf32>
      tpu.vector_store %arg5[%c0_34, %c0_35, %c0_36, %c0_37], %54 {strides = array<i32>} : memref<1x1x4x3xf32, #tpu.memory_space<vmem>>, vector<1x1x4x3xf32>,
    } else {
    }
    %c0 = arith.constant 0 : index
    %c0_1 = arith.constant 0 : index
    %c0_2 = arith.constant 0 : index
    %3 = vector.load %arg4[%c0, %c0_1, %c0_2] : memref<1x4x256xf32, #tpu.memory_space<vmem>>, vector<1x4x256xf32>
    %4 = vector.shape_cast %3 : vector<1x4x256xf32> to vector<4x256xf32>
    %cst = arith.constant dense<0xFF800000> : vector<256xf32>
    %5 = vector.multi_reduction <maximumf>, %4, %cst [0] : vector<4x256xf32> to vector<256xf32>
    %6 = vector.shape_cast %5 : vector<256xf32> to vector<1x256xf32>
    %7 = vector.broadcast %6 : vector<1x256xf32> to vector<4x256xf32>
    %8 = arith.subf %4, %7 : vector<4x256xf32>
    %9 = math.exp %8 : vector<4x256xf32>
    %cst_3 = arith.constant dense<0.000000e+00> : vector<256xf32>
    %10 = vector.multi_reduction <add>, %9, %cst_3 [0] : vector<4x256xf32> to vector<256xf32>
    %11 = vector.shape_cast %10 : vector<256xf32> to vector<1x256xf32>
    %12 = tpu.reciprocal %11 {approx = true} : vector<1x256xf32> -> vector<1x256xf32>
    %13 = arith.mulf %11, %12 : vector<1x256xf32>
    %cst_4 = arith.constant 2.000000e+00 : f32
    %14 = vector.broadcast %cst_4 : f32 to vector<1x256xf32>
    %15 = arith.subf %14, %13 : vector<1x256xf32>
    %16 = arith.mulf %12, %15 : vector<1x256xf32>
    %17 = vector.broadcast %16 : vector<1x256xf32> to vector<4x256xf32>
    %18 = arith.mulf %9, %17 : vector<4x256xf32>
    %c0_5 = arith.constant 0 : index
    %c0_6 = arith.constant 0 : index
    %c0_7 = arith.constant 0 : index
    %19 = vector.load %arg3[%c0_5, %c0_6, %c0_7] : memref<1x1x256xi32, #tpu.memory_space<vmem>>, vector<1x1x256xi32>
    %20 = vector.shape_cast %19 : vector<1x1x256xi32> to vector<1x256xi32>
    %21 = tpu.iota {dimensions = array<i32: 0>} : vector<4x256xi32>
    %22 = vector.broadcast %20 : vector<1x256xi32> to vector<4x256xi32>
    %23 = arith.cmpi eq, %22, %21 : vector<4x256xi32>
    %24 = arith.extui %23 : vector<4x256xi1> to vector<4x256xi32>
    %25 = arith.sitofp %24 : vector<4x256xi32> to vector<4x256xf32>
    %c0_8 = arith.constant 0 : index
    %c0_9 = arith.constant 0 : index
    %c0_10 = arith.constant 0 : index
    %c0_11 = arith.constant 0 : index
    %26 = vector.load %arg5[%c0_8, %c0_9, %c0_10, %c0_11] : memref<1x1x4x3xf32, #tpu.memory_space<vmem>>, vector<1x1x4x1xf32>
    %27 = vector.shape_cast %26 : vector<1x1x4x1xf32> to vector<4x1xf32>
    %28 = arith.mulf %18, %25 : vector<4x256xf32>
    %cst_12 = arith.constant dense<0.000000e+00> : vector<4xf32>
    %29 = vector.multi_reduction <add>, %28, %cst_12 [1] : vector<4x256xf32> to vector<4xf32>
    %30 = vector.shape_cast %29 : vector<4xf32> to vector<4x1xf32>
    %31 = arith.addf %27, %30 : vector<4x1xf32>
    %c0_13 = arith.constant 0 : index
    %c0_14 = arith.constant 0 : index
    %c0_15 = arith.constant 0 : index
    %c0_16 = arith.constant 0 : index
    %32 = vector.load %arg5[%c0_13, %c0_14, %c0_15, %c0_16] : memref<1x1x4x3xf32, #tpu.memory_space<vmem>>, vector<1x1x4x1xf32>
    %33 = vector.shape_cast %32 : vector<1x1x4x1xf32> to vector<4x1xf32>
    %34 = vector.shape_cast %31 : vector<4x1xf32> to vector<1x1x4x1xf32>
    tpu.vector_store %arg5[%c0_13, %c0_14, %c0_15, %c0_16], %34 {strides = array<i32>} : memref<1x1x4x3xf32, #tpu.memory_space<vmem>>, vector<1x1x4x1xf32>,
    %c0_17 = arith.constant 0 : index
    %c0_18 = arith.constant 0 : index
    %c0_19 = arith.constant 0 : index
    %c1 = arith.constant 1 : index
    %35 = vector.load %arg5[%c0_17, %c0_18, %c0_19, %c1] : memref<1x1x4x3xf32, #tpu.memory_space<vmem>>, vector<1x1x4x1xf32>
    %36 = vector.shape_cast %35 : vector<1x1x4x1xf32> to vector<4x1xf32>
    %cst_20 = arith.constant dense<0.000000e+00> : vector<4xf32>
    %37 = vector.multi_reduction <add>, %18, %cst_20 [1] : vector<4x256xf32> to vector<4xf32>
    %38 = vector.shape_cast %37 : vector<4xf32> to vector<4x1xf32>
    %39 = arith.addf %36, %38 : vector<4x1xf32>
    %c0_21 = arith.constant 0 : index
    %c0_22 = arith.constant 0 : index
    %c0_23 = arith.constant 0 : index
    %c1_24 = arith.constant 1 : index
    %40 = vector.load %arg5[%c0_21, %c0_22, %c0_23, %c1_24] : memref<1x1x4x3xf32, #tpu.memory_space<vmem>>, vector<1x1x4x1xf32>
    %41 = vector.shape_cast %40 : vector<1x1x4x1xf32> to vector<4x1xf32>
    %42 = vector.shape_cast %39 : vector<4x1xf32> to vector<1x1x4x1xf32>
    tpu.vector_store %arg5[%c0_21, %c0_22, %c0_23, %c1_24], %42 {strides = array<i32>} : memref<1x1x4x3xf32, #tpu.memory_space<vmem>>, vector<1x1x4x1xf32>,
    %c0_25 = arith.constant 0 : index
    %c0_26 = arith.constant 0 : index
    %c0_27 = arith.constant 0 : index
    %c2 = arith.constant 2 : index
    %43 = vector.load %arg5[%c0_25, %c0_26, %c0_27, %c2] : memref<1x1x4x3xf32, #tpu.memory_space<vmem>>, vector<1x1x4x1xf32>
    %44 = vector.shape_cast %43 : vector<1x1x4x1xf32> to vector<4x1xf32>
    %cst_28 = arith.constant dense<0.000000e+00> : vector<4xf32>
    %45 = vector.multi_reduction <add>, %25, %cst_28 [1] : vector<4x256xf32> to vector<4xf32>
    %46 = vector.shape_cast %45 : vector<4xf32> to vector<4x1xf32>
    %47 = arith.addf %44, %46 : vector<4x1xf32>
    %c0_29 = arith.constant 0 : index
    %c0_30 = arith.constant 0 : index
    %c0_31 = arith.constant 0 : index
    %c2_32 = arith.constant 2 : index
    %48 = vector.load %arg5[%c0_29, %c0_30, %c0_31, %c2_32] : memref<1x1x4x3xf32, #tpu.memory_space<vmem>>, vector<1x1x4x1xf32>
    %49 = vector.shape_cast %48 : vector<1x1x4x1xf32> to vector<4x1xf32>
    %50 = vector.shape_cast %47 : vector<4x1xf32> to vector<1x1x4x1xf32>
    tpu.vector_store %arg5[%c0_29, %c0_30, %c0_31, %c2_32], %50 {strides = array<i32>} : memref<1x1x4x3xf32, #tpu.memory_space<vmem>>, vector<1x1x4x1xf32>,
    return
  }
  func.func @transform_0(%arg0: i32, %arg1: i32, %arg2: i32) -> (i32, i32, i32) {
    %c1_i32 = arith.constant 1 : i32
    %0 = arith.muli %arg1, %c1_i32 : i32
    %1 = arith.addi %0, %arg2 : i32
    %c0_i32 = arith.constant 0 : i32
    %c0_i32_0 = arith.constant 0 : i32
    return %arg0, %c0_i32, %1 : i32, i32, i32
  }
  func.func @transform_1(%arg0: i32, %arg1: i32, %arg2: i32) -> (i32, i32, i32) {
    %c1_i32 = arith.constant 1 : i32
    %0 = arith.muli %arg1, %c1_i32 : i32
    %1 = arith.addi %0, %arg2 : i32
    %c0_i32 = arith.constant 0 : i32
    %c0_i32_0 = arith.constant 0 : i32
    return %arg0, %c0_i32, %1 : i32, i32, i32
  }
  func.func @transform_2(%arg0: i32, %arg1: i32, %arg2: i32) -> (i32, i32, i32, i32) {
    %c0_i32 = arith.constant 0 : i32
    %c0_i32_0 = arith.constant 0 : i32
    %c0_i32_1 = arith.constant 0 : i32
    return %arg0, %arg1, %c0_i32, %c0_i32_0 : i32, i32, i32, i32
  }
}

</mosaic_0001>

<bundles_post_ra>
// kernel: weighted_multiclass_dice_loss.1
= control target key start
LH: loop header
LB: loop body
LE: loop exit
PB: predicated region body
PF: predicated region fallthrough
CT: control target
= control target key end

     0   :  { %s530_s9 = smov 0   ;;  %s532_s10 = smov 0   ;;  %s585_s0 = inlined_call_operand.vmem [shape: s32[2,1,256], index: 0, kind: input, shape index: {}]   ;;  %s586_s1 = inlined_call_operand.vmem [shape: f32[2,4,256], index: 1, kind: input, shape index: {}]   ;;  %s587_s2 = inlined_call_operand.vmem [shape: f32[2,1,4,3], index: 2, kind: output, shape index: {}]  }
   0x1   :  { %s534_s11 = smov 0  }
   0x2 LB: > { %s31_s12 = sadd.s32 1, %s508_s10  ;;  %p448_p0 = scmp.ge.s32.totalorder %s512_s11, 1  ;;  %s512_s11 = sphi %s534_s11, %s12_s11   ;;  %s508_s10 = sphi %s532_s10, %s589_s10   ;;  %s504_s9 = sphi %s530_s9, %s588_s9  }
   0x3   : > { %p33_p1 = scmp.ge.s32.totalorder %s31_s12, 2  ;;  %p164_p2 = scmp.lt.s32.totalorder %s512_s11, 3 }
   0x5   : > { %s591_s12 = smov (%p33_p1, %s31_s12), 0  ;;  %p165_p3 = pnand %p448_p0, %p164_p2 }
   0x6   : > { %p204_p4 = scmp.lt.s32.totalorder (!%p165_p3), %s504_s9, 1  ;;  %v295_v0 = vlaneseq (!%p165_p3)  ;;  %vm242_vm0 = vcmask (!%p165_p3), 1043456   ;;  %vm236_vm1 = vcmask (!%p165_p3), 19456   ;;  %v514_v10 = vmov (!%p165_p3), 0.0  }
   0x7   : > { %168 = sbr.rel (%p165_p3) target bundleno = 258 (0x102), region = 28  ;;  %vm326_vm4 = vcmask (!%p165_p3), 3072   ;;  %vm338_vm5 = vcmask (!%p165_p3), 11272   ;;  %vm347_vm6 = vcmask (!%p165_p3), 19472  }
   0x8   : > { %v296_v1 = vshrl.u32 (!%p165_p3), %v295_v0, 7 }
   0xa   : > { %v299_v2 = vsub.s32 (!%p165_p3), 0, %v296_v1  ;;  %v303_v3 = vsub.s32 (!%p165_p3), 1, %v296_v1 }
   0xe   : > { %s593_s9 = smov (!%p204_p4, %s504_s9), 1 }
   0xf   : > { %s449_s13 = sshll.u32 %s593_s9, 1  ;;  %s457_s14 = sshll.u32 %s593_s9, 3 }
  0x10   : > { %s210_s17 = scalar_lea.vmem %s585_s0, %s449_s13  ;;  %s222_s20 = scalar_lea.vmem %s586_s1, %s457_s14 }
  0x11   : > { %s452_s21 = sshll.u32 %s593_s9, 2  ;;  %v238_v4 = vld [vmem:[%s222_s20] sm:$0xff] }
  0x12   : > { %v294_v5 = vld [vmem:[%s210_s17] sm:$0x3]  ;;  %s557_s24 = scalar_lea.vmem %s587_s2, %s452_s21  ;;  %v240_v6 = vcombine.high %v238_v4, %v238_v4  ;;  %v243_v7 = vsel %vm242_vm0, %v238_v4, -inf }
  0x13   : > { %v300_v8 = vrot.slane %v294_v5, %v299_v2  ;;  %v304_v9 = vrot.slane %v294_v5, %v303_v3  ;;  %237 = vst.msk [vmem:[%s557_s24] sm:$0xf] %vm236_vm1, %v514_v10  ;;  %v244_v11 = vrot.slane %v243_v7, 4 }
  0x14   : > { %v250_v12 = vsel %vm242_vm0, %v240_v6, -inf }
  0x15   : > { %vm305_vm2 = vcmp.eq.s32.totalorder %v300_v8, %v296_v1  ;;  %vm306_vm3 = vcmp.eq.s32.totalorder %v304_v9, %v296_v1  ;;  %v245_v13 = vmax.f32 %v243_v7, %v244_v11  ;;  %v251_v14 = vrot.slane %v250_v12, 4 }
  0x16   : > { %v453_v15 = vsel %vm305_vm2, 1.0, %v514_v10  ;;  %v454_v16 = vsel %vm306_vm3, 1.0, %v514_v10 }
  0x17   : > { %v341_v17 = vsel %vm242_vm0, %v453_v15, 0.0  ;;  %v342_v18 = vsel %vm242_vm0, %v454_v16, 0.0  ;;  %v246_v19 = vrot.slane %v245_v13, 2  ;;  %v252_v20 = vmax.f32 %v250_v12, %v251_v14 }
  0x18   : > { %v343_v21 = vadd.f32 %v342_v18, %v341_v17  ;;  %v314_v57 = vcombine.low %v453_v15, %v454_v16 }
  0x19   : > { %v247_v22 = vmax.f32 %v245_v13, %v246_v19  ;;  %v253_v23 = vrot.slane %v252_v20, 2 }
  0x1a   : > { %344 = vadd.xlane.f32.xlu1 %v343_v21 }
  0x1b   : > { %v248_v24 = vrot.slane %v247_v22, 1  ;;  %v254_v25 = vmax.f32 %v252_v20, %v253_v23 }
  0x1d   : > { %v249_v26 = vmax.f32 %v247_v22, %v248_v24  ;;  %v255_v27 = vrot.slane %v254_v25, 1 }
  0x1f   : > { %v256_v28 = vmax.f32 %v254_v25, %v255_v27 }
  0x21   : > { %v259_v29 = vcombine.low %v249_v26, %v256_v28 }
  0x23   : > { %v261_v30 = vsub.f32 %v238_v4, %v259_v29  ;;  %v311_v4 = vld [vmem:[%s557_s24] sm:$0xf] }
  0x25   : > { %v262_v31 = vmul.f32 1.442695, %v261_v30 }
  0x27   : > { %484 = vpow2.f32 %v262_v31 }
  0x31   : > { %v485_v32 = vpop.eup %484 }
  0x32   : > { %v265_v33 = vcombine.high %v485_v32, %v485_v32  ;;  %v267_v34 = vsel %vm242_vm0, %v485_v32, 0.0 }
  0x33   : > { %v268_v35 = vrot.slane %v267_v34, 4 }
  0x34   : > { %v274_v36 = vsel %vm242_vm0, %v265_v33, 0.0 }
  0x35   : > { %v269_v37 = vadd.f32 %v268_v35, %v267_v34  ;;  %v275_v38 = vrot.slane %v274_v36, 4 }
  0x37   : > { %v270_v39 = vrot.slane %v269_v37, 2  ;;  %v276_v40 = vadd.f32 %v275_v38, %v274_v36 }
  0x39   : > { %v271_v41 = vadd.f32 %v270_v39, %v269_v37  ;;  %v277_v42 = vrot.slane %v276_v40, 2 }
  0x3b   : > { %v272_v43 = vrot.slane %v271_v41, 1  ;;  %v278_v44 = vadd.f32 %v277_v42, %v276_v40 }
  0x3d   : > { %v273_v45 = vadd.f32 %v272_v43, %v271_v41  ;;  %v279_v46 = vrot.slane %v278_v44, 1 }
  0x3f   : > { %v280_v47 = vadd.f32 %v279_v46, %v278_v44  ;;  %486 = vrcp.f32 %v273_v45 }
  0x41   : > { %488 = vrcp.f32 %v280_v47 }
  0x49   : > { %v487_v48 = vpop.eup %486 }
  0x4a   : > { %v283_v49 = vmul.f32 %v487_v48, %v273_v45 }
  0x4b   : > { %v489_v50 = vpop.eup %488 }
  0x4c   : > { %v284_v51 = vmul.f32 %v489_v50, %v280_v47  ;;  %v285_v52 = vsub.f32 2.0, %v283_v49 }
  0x4e   : > { %v286_v53 = vsub.f32 2.0, %v284_v51  ;;  %v287_v54 = vmul.f32 %v487_v48, %v285_v52 }
  0x50   : > { %v288_v55 = vmul.f32 %v489_v50, %v286_v53 }
  0x52   : > { %v291_v56 = vcombine.low %v287_v54, %v288_v55 }
  0x54   : > { %v293_v58 = vmul.f32 %v485_v32, %v291_v56 }
  0x56   : > { %v316_v59 = vmul.f32 %v314_v57, %v293_v58  ;;  %v330_v60 = vcombine.high %v293_v58, %v293_v58  ;;  %v332_v0 = vsel %vm242_vm0, %v293_v58, 0.0 }
  0x58   : > { %v318_v61 = vcombine.high %v316_v59, %v316_v59  ;;  %v320_v62 = vsel %vm242_vm0, %v316_v59, 0.0  ;;  %v333_v1 = vsel %vm242_vm0, %v330_v60, 0.0 }
  0x59   : > { %v334_v3 = vadd.f32 %v333_v1, %v332_v0 }
  0x5a   : > { %v321_v63 = vsel %vm242_vm0, %v318_v61, 0.0 }
  0x5b   : > { %v322_v2 = vadd.f32 %v321_v63, %v320_v62 }
  0x5d   : > { %323 = vadd.xlane.f32.xlu0 %v322_v2 }
  0x61   : > { %335 = vadd.xlane.f32.xlu0 %v334_v3 }
  0xa7   : > { %v345_v10 = vpop.xlane.xlu1 %344 }
  0xea   : > { %v324_v5 = vpop.xlane.xlu0 %323 }
  0xeb   : > { %v325_v6 = vadd.f32 %v324_v5, %v311_v4 }
  0xed   : > { %327 = vst.msk [vmem:[%s557_s24] sm:$0xf] %vm326_vm4, %v325_v6 }
  0xee   : > { %v336_v7 = vpop.xlane.xlu0 %335 }
  0xf4   : > { %v328_v8 = vld [vmem:[%s557_s24] sm:$0xf] }
  0xf5   : > { %v337_v9 = vadd.f32 %v336_v7, %v328_v8 }
  0xf7   : > { %339 = vst.msk [vmem:[%s557_s24] sm:$0xf] %vm338_vm5, %v337_v9 }
  0xfe   : > { %v340_v11 = vld [vmem:[%s557_s24] sm:$0xf] }
  0xff   : > { %v346_v12 = vadd.f32 %v345_v10, %v340_v11 }
 0x101   : > { %348 = vst.msk [vmem:[%s557_s24] sm:$0xf] %vm347_vm6, %v346_v12 }
 0x102 PF: > { %s12_s11 = sadd.s32 1, %s512_s11   ;;  %s588_s9 = smov %s508_s10 }
 0x103   : > { %p9_p5 = scmp.ge.s32.totalorder %s12_s11, 4   ;;  %s589_s10 = smov %s591_s12 }
 0x105   :  { %11 = sbr.rel (!%p9_p5) target bundleno = 2 (0x2), region = 65 }

</bundles_post_ra>
